<compile_context>
chip_gen: v6e
topology: v6e:2x2x1
jax: 0.10.0
libtpu: 0.0.40
codegen_flags: <defaults>
</compile_context>

<pallas_src>
import functools

import jax
import jax.numpy as jnp
from jax.experimental import pallas as pl
from jax.experimental.pallas import tpu as pltpu


def _complex_dropout_kernel(xr_ref, xi_ref, bits_ref, or_ref, oi_ref, *,
                            threshold, scale):
    """Elementwise complex dropout on one (TILE, 128) tile.

    xr_ref / xi_ref : VMEM tiles of the real / imaginary planes (float32)
    bits_ref        : VMEM tile of uint32 random bits (one per complex element)
    or_ref / oi_ref : VMEM output tiles
    threshold/scale : static Python scalars baked at trace time
    """
    keep = bits_ref[...] >= jnp.uint32(threshold)          # P(keep) = 1 - p
    mask = jnp.where(keep, jnp.float32(scale), jnp.float32(0.0))
    or_ref[...] = xr_ref[...] * mask
    oi_ref[...] = xi_ref[...] * mask


def complex_dropout(x, p, training=True, key=None):
    """Pallas implementation of ComplexDropput.forward."""
    p = float(p)
    if (not training) or p <= 0.0:
        # F.dropout with training=False (or p=0) is the identity.
        return x
    if p >= 1.0:
        return jnp.zeros_like(x)
    if key is None:
        key = jax.random.PRNGKey(0)

    orig_shape = x.shape
    xr = jnp.real(x).astype(jnp.float32).reshape(-1)
    xi = jnp.imag(x).astype(jnp.float32).reshape(-1)
    n = xr.size

    LANES = 128
    rows = -(-n // LANES)                       # ceil(n / 128)
    tile = 1024                                 # 512 KiB/plane/buffer at f32
    if rows <= tile:
        tile = max(8, ((rows + 7) // 8) * 8)    # small inputs: one aligned block
    rows_p = -(-rows // tile) * tile            # pad rows to a tile multiple
    pad = rows_p * LANES - n
    if pad:
        xr = jnp.pad(xr, (0, pad))
        xi = jnp.pad(xi, (0, pad))
    xr2 = xr.reshape(rows_p, LANES)
    xi2 = xi.reshape(rows_p, LANES)

    # One uint32 of randomness per complex element, shared by real & imag.
    bits = jax.random.bits(key, (rows_p, LANES), jnp.uint32)

    threshold = min(int(round(p * (2 ** 32))), 2 ** 32 - 1)
    scale = 1.0 / (1.0 - p)
    kernel = functools.partial(_complex_dropout_kernel,
                               threshold=threshold, scale=scale)

    tile_spec = pl.BlockSpec((tile, LANES), lambda i: (i, 0))
    out_r, out_i = pl.pallas_call(
        kernel,
        grid=(rows_p // tile,),
        in_specs=[tile_spec, tile_spec, tile_spec],
        out_specs=[tile_spec, tile_spec],
        out_shape=(
            jax.ShapeDtypeStruct((rows_p, LANES), jnp.float32),
            jax.ShapeDtypeStruct((rows_p, LANES), jnp.float32),
        ),
        compiler_params=pltpu.CompilerParams(
            dimension_semantics=("parallel",)),
    )(xr2, xi2, bits)

    out = jax.lax.complex(out_r.reshape(-1)[:n], out_i.reshape(-1)[:n])
    return out.reshape(orig_shape).astype(x.dtype)


if __name__ == "__main__":
    key = jax.random.PRNGKey(0)
    kr, ki, kd = jax.random.split(key, 3)

    # Small NCHW complex input: batch=2, channels=4, spatial=16x16
    shape = (2, 4, 16, 16)
    x = jax.lax.complex(
        jax.random.normal(kr, shape, dtype=jnp.float32),
        jax.random.normal(ki, shape, dtype=jnp.float32),
    )

    p = 0.3
    out = jax.block_until_ready(complex_dropout(x, p, training=True, key=kd))

    # Sanity checks on dropout semantics: every element is either kept
    # (both re & im scaled by 1/(1-p)) or dropped (both re & im exactly 0).
    scale = 1.0 / (1.0 - p)
    xr, xi = jnp.real(x), jnp.imag(x)
    outr, outi = jnp.real(out), jnp.imag(out)
    kept = (jnp.isclose(outr, xr * scale, rtol=1e-5, atol=1e-6)
            & jnp.isclose(outi, xi * scale, rtol=1e-5, atol=1e-6))
    dropped = (outr == 0.0) & (outi == 0.0)
    assert bool(jnp.all(kept | dropped)), "mask must be 0 or 1/(1-p), shared by re/im"
    drop_frac = float(jnp.mean(dropped.astype(jnp.float32)))
    assert 0.15 < drop_frac < 0.45, f"drop fraction {drop_frac} far from p={p}"
    assert out.shape == x.shape and out.dtype == x.dtype

    # Identity path when training=False
    out_eval = jax.block_until_ready(complex_dropout(x, p, training=False))
    assert bool(jnp.allclose(out_eval, x))

    print("KERNEL_OK")
</pallas_src>

<mosaic_0001>
module attributes {stable_mosaic.version = 11 : i64} {
  func.func @_complex_dropout_kernel(%arg0: i32, %arg1: memref<16x128xf32, #tpu.memory_space<vmem>>, %arg2: memref<16x128xf32, #tpu.memory_space<vmem>>, %arg3: memref<16x128xi32, #tpu.memory_space<vmem>>, %arg4: memref<16x128xf32, #tpu.memory_space<vmem>>, %arg5: memref<16x128xf32, #tpu.memory_space<vmem>>) attributes {dimension_semantics = [#tpu.dimension_semantics<parallel>], iteration_bounds = array<i64: 1>, scalar_prefetch = 0 : i64, scratch_operands = 0 : i64, tpu.core_type = #tpu.core_type<tc>, window_params = [{transform_indices = @transform_0, window_bounds = array<i64: 16, 128>}, {transform_indices = @transform_1, window_bounds = array<i64: 16, 128>}, {transform_indices = @transform_2, window_bounds = array<i64: 16, 128>}, {transform_indices = @transform_3, window_bounds = array<i64: 16, 128>}, {transform_indices = @transform_4, window_bounds = array<i64: 16, 128>}]} {
    %c0 = arith.constant 0 : index
    %c0_0 = arith.constant 0 : index
    %0 = vector.load %arg3[%c0, %c0_0] : memref<16x128xi32, #tpu.memory_space<vmem>>, vector<16x128xi32>
    %c1288490189_i32 = arith.constant 1288490189 : i32
    %1 = vector.broadcast %c1288490189_i32 : i32 to vector<16x128xi32>
    %2 = arith.cmpi uge, %0, %1 : vector<16x128xi32>
    %cst = arith.constant 1.42857146 : f32
    %cst_1 = arith.constant 0.000000e+00 : f32
    %3 = vector.broadcast %cst : f32 to vector<16x128xf32>
    %4 = vector.broadcast %cst_1 : f32 to vector<16x128xf32>
    %5 = arith.select %2, %3, %4 : vector<16x128xi1>, vector<16x128xf32>
    %c0_2 = arith.constant 0 : index
    %c0_3 = arith.constant 0 : index
    %6 = vector.load %arg1[%c0_2, %c0_3] : memref<16x128xf32, #tpu.memory_space<vmem>>, vector<16x128xf32>
    %7 = arith.mulf %6, %5 : vector<16x128xf32>
    %c0_4 = arith.constant 0 : index
    %c0_5 = arith.constant 0 : index
    %8 = vector.load %arg4[%c0_4, %c0_5] : memref<16x128xf32, #tpu.memory_space<vmem>>, vector<16x128xf32>
    tpu.vector_store %arg4[%c0_4, %c0_5], %7 {strides = array<i32>} : memref<16x128xf32, #tpu.memory_space<vmem>>, vector<16x128xf32>,
    %c0_6 = arith.constant 0 : index
    %c0_7 = arith.constant 0 : index
    %9 = vector.load %arg2[%c0_6, %c0_7] : memref<16x128xf32, #tpu.memory_space<vmem>>, vector<16x128xf32>
    %10 = arith.mulf %9, %5 : vector<16x128xf32>
    %c0_8 = arith.constant 0 : index
    %c0_9 = arith.constant 0 : index
    %11 = vector.load %arg5[%c0_8, %c0_9] : memref<16x128xf32, #tpu.memory_space<vmem>>, vector<16x128xf32>
    tpu.vector_store %arg5[%c0_8, %c0_9], %10 {strides = array<i32>} : memref<16x128xf32, #tpu.memory_space<vmem>>, vector<16x128xf32>,
    return
  }
  func.func @transform_0(%arg0: i32) -> (i32, i32) {
    %c0_i32 = arith.constant 0 : i32
    %c0_i32_0 = arith.constant 0 : i32
    return %arg0, %c0_i32 : i32, i32
  }
  func.func @transform_1(%arg0: i32) -> (i32, i32) {
    %c0_i32 = arith.constant 0 : i32
    %c0_i32_0 = arith.constant 0 : i32
    return %arg0, %c0_i32 : i32, i32
  }
  func.func @transform_2(%arg0: i32) -> (i32, i32) {
    %c0_i32 = arith.constant 0 : i32
    %c0_i32_0 = arith.constant 0 : i32
    return %arg0, %c0_i32 : i32, i32
  }
  func.func @transform_3(%arg0: i32) -> (i32, i32) {
    %c0_i32 = arith.constant 0 : i32
    %c0_i32_0 = arith.constant 0 : i32
    return %arg0, %c0_i32 : i32, i32
  }
  func.func @transform_4(%arg0: i32) -> (i32, i32) {
    %c0_i32 = arith.constant 0 : i32
    %c0_i32_0 = arith.constant 0 : i32
    return %arg0, %c0_i32 : i32, i32
  }
}

</mosaic_0001>

<bundles_post_ra>
// kernel: tpu_custom_call.1
= control target key start
LH: loop header
LB: loop body
LE: loop exit
PB: predicated region body
PF: predicated region fallthrough
CT: control target
= control target key end

     0   :  { %10 = vsyncpa [#allocation3], 0  ;;  %s290_s0 = inlined_call_operand.hbm [shape: f32[16,128], index: 0, kind: input, shape index: {}]   ;;  %s291_s1 = inlined_call_operand.hbm [shape: f32[16,128], index: 1, kind: input, shape index: {}]   ;;  %s292_s2 = inlined_call_operand.hbm [shape: u32[16,128], index: 2, kind: input, shape index: {}]   ;;  %s293_s3 = inlined_call_operand.hbm [shape: f32[16,128], index: 3, kind: output, shape index: {0}]   ;;  %s294_s4 = inlined_call_operand.hbm [shape: f32[16,128], index: 4, kind: output, shape index: {1}]  }
   0x1   :  { %11 = vsyncpa [#allocation6], 0 }
   0x2   :  { %12 = vsyncpa [#allocation4], 0 }
   0x3   :  { %13 = vsyncpa [#allocation10], 0  ;;  %s227_s15 = smov [#allocation5]   ;;  %s228_s17 = smov [#allocation2]  }
   0x4   :  { %s31_s16 = sshll.u32 %s227_s15, 4  ;;  %s19_s18 = sshll.u32 %s228_s17, 4  ;;  %s32_s16 = int_to_ptr.vmem [resolvable:$true] %s31_s16  ;;  %s20_s18 = int_to_ptr.vmem [resolvable:$true] %s19_s18 }
   0x5   :  { %s127_s19 = scalar_lea.vmem %s32_s16, 256  ;;  %p132_p1 = scmp.lt.s32.totalorder %s32_s16, %s32_s16 }
   0x6   :  { %p128_p0 = scmp.ne.s32.totalorder %s32_s16, %s127_s19  ;;  %p133_p2 = scmp.lt.s32.totalorder %s127_s19, %s127_s19 }
   0x8   :  { %p134_p3 = por %p133_p2, %p132_p1 }
   0xa   :  { %p135_p4 = pnand %p134_p3, %p128_p0 }
   0xc   :  { %138 = shalt.err (!%p135_p4)
}
   0xd   :  { %s229_s20 = smov 128   ;;  %s230_s21 = smov 8  }
   0xe   :  { %37 = dma.hbm_to_vmem [thread:$0]  %s291_s1, 256, %s32_s16, [#allocation6], %s229_s20, %s229_s20, %s230_s21  }
   0xf   :  { %s147_s24 = scalar_lea.vmem %s20_s18, 256  ;;  %p152_p6 = scmp.lt.s32.totalorder %s20_s18, %s20_s18 }
  0x10   :  { %p148_p5 = scmp.ne.s32.totalorder %s20_s18, %s147_s24  ;;  %p153_p7 = scmp.lt.s32.totalorder %s147_s24, %s147_s24 }
  0x12   :  { %p154_p8 = por %p153_p7, %p152_p6 }
  0x14   :  { %p155_p9 = pnand %p154_p8, %p148_p5 }
  0x16   :  { %158 = shalt.err (!%p155_p9)
}
  0x17   :  { %25 = dma.hbm_to_vmem [thread:$0]  %s290_s0, 256, %s20_s18, [#allocation3], %s229_s20, %s229_s20, %s230_s21  }
  0x18   :  { %s231_s27 = smov [#allocation7]  }
  0x19   :  { %s43_s28 = sshll.u32 %s231_s27, 4  ;;  %s44_s28 = int_to_ptr.vmem [resolvable:$true] %s43_s28 }
  0x1a   :  { %s167_s29 = scalar_lea.vmem %s44_s28, 256  ;;  %p172_p11 = scmp.lt.s32.totalorder %s44_s28, %s44_s28 }
  0x1b   :  { %p168_p10 = scmp.ne.s32.totalorder %s44_s28, %s167_s29  ;;  %p173_p12 = scmp.lt.s32.totalorder %s167_s29, %s167_s29 }
  0x1d   :  { %p174_p13 = por %p173_p12, %p172_p11 }
  0x1f   :  { %p175_p0 = pnand %p174_p13, %p168_p10 }
  0x21   :  { %178 = shalt.err (!%p175_p0)
}
  0x22   :  { %49 = dma.hbm_to_vmem [thread:$0]  %s292_s2, 256, %s44_s28, [#allocation6], %s229_s20, %s229_s20, %s230_s21  }
  0x23   :  { %219 = dma.done.wait [#allocation3], 256  }
  0x24   :  { %220 = vsyncadd [#allocation3], 4294967040 }
  0x25   :  { %221 = dma.done.wait [#allocation6], 512  }
  0x26   :  { %222 = vsyncadd [#allocation6], 4294966784  ;;  %v59_v0 = vld [vmem:[#allocation7] sm:$0xff]  ;;  %v60_v2 = vld [vmem:[#allocation7 + $0x8] sm:$0xff]  ;;  %s232_s0 = smov [#allocation8]   ;;  %s233_s6 = smov [#allocation9]  }
  0x27   :  { %v65_v1 = vld [vmem:[#allocation2] sm:$0xff]  ;;  %s82_s5 = sshll.u32 %s232_s0, 4  ;;  %s94_s7 = sshll.u32 %s233_s6, 4  ;;  %vm61_vm0 = vcmp.ge.u32.totalorder %v59_v0, 1288490189  ;;  %v66_v3 = vld [vmem:[#allocation2 + $0x8] sm:$0xff]  ;;  %s83_s5 = int_to_ptr.vmem [resolvable:$true] %s82_s5  ;;  %s95_s7 = int_to_ptr.vmem [resolvable:$true] %s94_s7 }
  0x28   :  { %vm62_vm1 = vcmp.ge.u32.totalorder %v60_v2, 1288490189  ;;  %v71_v4 = vld [vmem:[#allocation5] sm:$0xff]  ;;  %v234_v5 = vmov 0.0   ;;  %v72_v8 = vld [vmem:[#allocation5 + $0x8] sm:$0xff]  ;;  %s179_s2 = scalar_lea.vmem %s83_s5, 256  ;;  %p184_p2 = scmp.lt.s32.totalorder %s83_s5, %s83_s5 }
  0x29   :  { %v63_v6 = vsel %vm61_vm0, 1.4285715, %v234_v5  ;;  %v64_v7 = vsel %vm62_vm1, 1.4285715, %v234_v5  ;;  %p180_p1 = scmp.ne.s32.totalorder %s83_s5, %s179_s2  ;;  %p185_p3 = scmp.lt.s32.totalorder %s179_s2, %s179_s2 }
  0x2a   :  { %v67_v9 = vmul.f32 %v65_v1, %v63_v6  ;;  %v68_v10 = vmul.f32 %v66_v3, %v64_v7  ;;  %v73_v11 = vmul.f32 %v71_v4, %v63_v6  ;;  %v74_v12 = vmul.f32 %v72_v8, %v64_v7 }
  0x2b   :  { %p186_p4 = por %p185_p3, %p184_p2 }
  0x2c   :  { %69 = vst [vmem:[#allocation8] sm:$0xff] %v67_v9  ;;  %70 = vst [vmem:[#allocation8 + $0x8] sm:$0xff] %v68_v10 }
  0x2d   :  { %75 = vst [vmem:[#allocation9] sm:$0xff] %v73_v11  ;;  %76 = vst [vmem:[#allocation9 + $0x8] sm:$0xff] %v74_v12  ;;  %p187_p5 = pnand %p186_p4, %p180_p1 }
  0x2f   :  { %190 = shalt.err (!%p187_p5)
}
  0x30   :  { %88 = dma.vmem_to_hbm [thread:$0]  %s83_s5, 256, %s293_s3, [#allocation4], %s229_s20, %s229_s20, %s230_s21  }
  0x31   :  { %s199_s10 = scalar_lea.vmem %s95_s7, 256  ;;  %p204_p7 = scmp.lt.s32.totalorder %s95_s7, %s95_s7 }
  0x32   :  { %p200_p6 = scmp.ne.s32.totalorder %s95_s7, %s199_s10  ;;  %p205_p8 = scmp.lt.s32.totalorder %s199_s10, %s199_s10 }
  0x34   :  { %p206_p9 = por %p205_p8, %p204_p7 }
  0x36   :  { %p207_p10 = pnand %p206_p9, %p200_p6 }
  0x38   :  { %210 = shalt.err (!%p207_p10)
}
  0x39   :  { %100 = dma.vmem_to_hbm [thread:$0]  %s95_s7, 256, %s294_s4, [#allocation10], %s229_s20, %s229_s20, %s230_s21  }
  0x3a   :  { %223 = dma.done.wait [#allocation4], 256  }
  0x3b   :  { %224 = vsyncadd [#allocation4], 4294967040 }
  0x3c   :  { %225 = dma.done.wait [#allocation10], 256  }
  0x3d   :  { %226 = vsyncadd [#allocation10], 4294967040 }
  0x3e   :  { %107 = vsyncpa [#allocation3], 1 }
  0x3f   :  { %108 = vsyncpa [#allocation6], 1 }
  0x40   :  { %109 = vsyncpa [#allocation4], 1 }
  0x41   :  { %110 = vsyncpa [#allocation10], 1 }

</bundles_post_ra>
